<compile_context>
chip_gen: v5e
topology: v5e:2x2
jax: 0.10.0
libtpu: 0.0.40
codegen_flags: <defaults>
</compile_context>

<pallas_src>
import jax
import jax.numpy as jnp
from jax.experimental import pallas as pl
from jax.experimental.pallas import tpu as pltpu


def _round_up(x, m):
    return ((x + m - 1) // m) * m


def attention_fusion_kernel(feats_ref, w1_ref, b1_ref, w2_ref, b2_ref, out_ref):
    """feats_ref (M, tB, D) f32, w1_ref (M, D, H) bf16, b1_ref (M, 1, H) f32,
    w2_ref (M, 1, H) f32, b2_ref (M,) f32 in SMEM, out_ref (tB, D) f32."""
    M = feats_ref.shape[0]

    # ---- Pass 1: per-modality attention logits, each kept as a (tB, 1) column.
    scores = []
    for i in range(M):                                   # M is small & static
        x = feats_ref[i]                                 # (tB, D) f32
        h = jnp.dot(x.astype(jnp.bfloat16), w1_ref[i],
                    preferred_element_type=jnp.float32)  # MXU, bf16 in / f32 acc
        h = jnp.maximum(h + b1_ref[i], 0.0)              # bias + ReLU on VPU
        # Second linear is H -> 1: VPU multiply + lane reduction, not an N=1 matmul.
        s = jnp.sum(h * w2_ref[i], axis=-1, keepdims=True) + b2_ref[i]
        scores.append(s)                                 # (tB, 1)

    # ---- Softmax over the modality axis, elementwise on the score list (no concat).
    m = scores[0]
    for i in range(1, M):
        m = jnp.maximum(m, scores[i])
    exps = [jnp.exp(s - m) for s in scores]
    denom = exps[0]
    for i in range(1, M):
        denom = denom + exps[i]
    inv = pl.reciprocal(denom, approx=True)              # EUP slot, effectively free

    # ---- Weighted sum of features; init from the first term (no zeros materialize).
    acc = (exps[0] * inv) * feats_ref[0]
    for i in range(1, M):
        acc = acc + (exps[i] * inv) * feats_ref[i]
    out_ref[...] = acc.astype(out_ref.dtype)


def _pick_block_b(B, M, D, H, budget_bytes):
    """Largest batch tile (multiple of 8) whose double-buffered working set fits."""
    weights = M * D * H * 2 + 2 * M * H * 4                 # bf16 w1 + f32 b1/w2
    per_row = 2 * (M * D * 4) + 2 * (D * 4) + M * H * 4     # feats/out dbl-buf + hidden
    tb = (budget_bytes - weights) // max(per_row, 1)
    tb = max(8, min(int(tb), B, 1024))
    return max(8, (tb // 8) * 8)


def attention_fusion(feats, w1, b1, w2, b2, *, block_b=None,
                     vmem_budget_bytes=40 * 1024 * 1024):
    """feats: (M, B, D) f32;  w1: (M, D, H);  b1: (M, H);  w2: (M, H);  b2: (M,).

    Weights are "input-major" (x @ W), i.e. torch Linear weights pre-transposed.
    Returns the fused features (B, D), matching the PyTorch forward.
    """
    M, B, D = feats.shape
    H = w1.shape[-1]

    # Lane-dense padding (exact: zero rows/cols contribute nothing to scores/output).
    D_p, H_p = _round_up(D, 128), _round_up(H, 128)
    if D_p != D:
        feats = jnp.pad(feats, ((0, 0), (0, 0), (0, D_p - D)))
        w1 = jnp.pad(w1, ((0, 0), (0, D_p - D), (0, 0)))
    if H_p != H:
        w1 = jnp.pad(w1, ((0, 0), (0, 0), (0, H_p - H)))
        b1 = jnp.pad(b1, ((0, 0), (0, H_p - H)))
        w2 = jnp.pad(w2, ((0, 0), (0, H_p - H)))

    if block_b is None:
        block_b = _pick_block_b(B, M, D_p, H_p, vmem_budget_bytes)
    block_b = max(8, (min(block_b, max(B, 8)) // 8) * 8)

    B_p = _round_up(B, block_b)
    if B_p != B:
        feats = jnp.pad(feats, ((0, 0), (0, B_p - B), (0, 0)))
    grid = (B_p // block_b,)

    w1_bf16 = w1.astype(jnp.bfloat16)                        # bf16 MXU operand
    b1_r = b1.reshape(M, 1, H_p).astype(jnp.float32)
    w2_r = w2.reshape(M, 1, H_p).astype(jnp.float32)
    b2_r = b2.reshape(M).astype(jnp.float32)

    feats_tile = M * block_b * D_p * 4
    out_tile = block_b * D_p * 4
    weights_bytes = w1_bf16.size * 2 + b1_r.size * 4 + w2_r.size * 4
    hidden_bytes = M * block_b * H_p * 4
    vmem_limit = int(min(max(2 * feats_tile + 2 * out_tile + 2 * weights_bytes
                             + hidden_bytes + (4 << 20), 16 << 20), 48 << 20))

    cost = pl.CostEstimate(
        flops=int(2 * M * B_p * D_p * H_p + 2 * M * B_p * H_p + 5 * M * B_p * D_p),
        transcendentals=int((M + 1) * B_p),
        bytes_accessed=int(feats.size * 4 + B_p * D_p * 4 + weights_bytes + M * 4),
    )

    out = pl.pallas_call(
        attention_fusion_kernel,
        out_shape=jax.ShapeDtypeStruct((B_p, D_p), feats.dtype),
        grid=grid,
        in_specs=[
            pl.BlockSpec((M, block_b, D_p), lambda b: (0, b, 0)),    # feats: tiled over B
            pl.BlockSpec((M, D_p, H_p), lambda b: (0, 0, 0)),        # w1: VMEM-resident
            pl.BlockSpec((M, 1, H_p), lambda b: (0, 0, 0)),          # b1: VMEM-resident
            pl.BlockSpec((M, 1, H_p), lambda b: (0, 0, 0)),          # w2: VMEM-resident
            pl.BlockSpec(memory_space=pltpu.MemorySpace.SMEM),       # b2: SMEM scalars
        ],
        out_specs=pl.BlockSpec((block_b, D_p), lambda b: (b, 0)),
        compiler_params=pltpu.CompilerParams(
            dimension_semantics=("parallel",),
            vmem_limit_bytes=vmem_limit,
        ),
        cost_estimate=cost,
    )(feats, w1_bf16, b1_r, w2_r, b2_r)

    return out[:B, :D]


def reference_attention_fusion(feats, w1, b1, w2, b2):
    """Pure-JAX (f32) reference matching the PyTorch forward."""
    M = feats.shape[0]
    scores = []
    for i in range(M):
        h = jnp.maximum(feats[i] @ w1[i] + b1[i][None, :], 0.0)
        scores.append(h @ w2[i][:, None] + b2[i])
    scores = jnp.concatenate(scores, axis=1)                 # (B, M)
    w = jax.nn.softmax(scores, axis=1)
    fused = jnp.zeros_like(feats[0])
    for i in range(M):
        fused = fused + w[:, i:i + 1] * feats[i]
    return fused


if __name__ == "__main__":
    # Small synthetic problem: 3 modalities, lane-aligned dims, grid of 2 batch tiles.
    M, B, D, H = 3, 16, 128, 128

    key = jax.random.PRNGKey(0)
    k_feat, k_w1, k_b1, k_w2, k_b2 = jax.random.split(key, 5)

    feats = jax.random.normal(k_feat, (M, B, D), dtype=jnp.float32)

    # Deterministic parameter init (synthetic, not a checkpoint load).
    w1 = jax.random.normal(k_w1, (M, D, H), dtype=jnp.float32) * 0.1
    b1 = jax.random.normal(k_b1, (M, H), dtype=jnp.float32) * 0.1
    w2 = jax.random.normal(k_w2, (M, H), dtype=jnp.float32) * 0.1
    b2 = jax.random.normal(k_b2, (M,), dtype=jnp.float32) * 0.1

    out = attention_fusion(feats, w1, b1, w2, b2, block_b=8)   # grid = (2,)
    out = jax.block_until_ready(out)

    ref = reference_attention_fusion(feats, w1, b1, w2, b2)
    assert out.shape == (B, D)
    # bf16 MXU inputs + approx reciprocal -> relaxed tolerance vs the f32 reference.
    assert jnp.allclose(out, ref, atol=5e-2, rtol=5e-2), (
        f"Pallas kernel mismatch vs reference, max abs err "
        f"{float(jnp.max(jnp.abs(out - ref))):.3e}")

    print("KERNEL_OK")
</pallas_src>

<mosaic_0001>
module attributes {stable_mosaic.version = 11 : i64} {
  func.func @attention_fusion_kernel(%arg0: i32, %arg1: memref<3x8x128xf32, #tpu.memory_space<vmem>>, %arg2: memref<3x128x128xbf16, #tpu.memory_space<vmem>>, %arg3: memref<3x1x128xf32, #tpu.memory_space<vmem>>, %arg4: memref<3x1x128xf32, #tpu.memory_space<vmem>>, %arg5: memref<3xf32, #tpu.memory_space<smem>>, %arg6: memref<8x128xf32, #tpu.memory_space<vmem>>) attributes {dimension_semantics = [#tpu.dimension_semantics<parallel>], iteration_bounds = array<i64: 2>, scalar_prefetch = 0 : i64, scratch_operands = 0 : i64, tpu.core_type = #tpu.core_type<tc>, window_params = [{transform_indices = @transform_0, window_bounds = array<i64: 3, 8, 128>}, {pipeline_mode = #tpu.pipeline_mode<synchronous>, transform_indices = @transform_1, window_bounds = array<i64: 3, 128, 128>}, {pipeline_mode = #tpu.pipeline_mode<synchronous>, transform_indices = @transform_2, window_bounds = array<i64: 3, 1, 128>}, {pipeline_mode = #tpu.pipeline_mode<synchronous>, transform_indices = @transform_3, window_bounds = array<i64: 3, 1, 128>}, {transform_indices = @transform_4, window_bounds = array<i64: 3>}, {transform_indices = @transform_5, window_bounds = array<i64: 8, 128>}]} {
    %c0 = arith.constant 0 : index
    %c0_0 = arith.constant 0 : index
    %c0_1 = arith.constant 0 : index
    %0 = vector.load %arg1[%c0, %c0_0, %c0_1] : memref<3x8x128xf32, #tpu.memory_space<vmem>>, vector<1x8x128xf32>
    %1 = vector.shape_cast %0 : vector<1x8x128xf32> to vector<8x128xf32>
    %2 = arith.truncf %1 : vector<8x128xf32> to vector<8x128xbf16>
    %c0_2 = arith.constant 0 : index
    %c0_3 = arith.constant 0 : index
    %c0_4 = arith.constant 0 : index
    %3 = vector.load %arg2[%c0_2, %c0_3, %c0_4] : memref<3x128x128xbf16, #tpu.memory_space<vmem>>, vector<1x128x128xbf16>
    %4 = vector.shape_cast %3 : vector<1x128x128xbf16> to vector<128x128xbf16>
    %cst = arith.constant dense<0.000000e+00> : vector<8x128xf32>
    %5 = tpu.matmul %2, %4, %cst {dimension_numbers = #tpu.dot_dimension_numbers<[1], [0], [0], [1], [0, 0, 1, 1], [], []>} : vector<8x128xbf16>, vector<128x128xbf16>, vector<8x128xf32> -> vector<8x128xf32>
    %c0_5 = arith.constant 0 : index
    %c0_6 = arith.constant 0 : index
    %c0_7 = arith.constant 0 : index
    %6 = vector.load %arg3[%c0_5, %c0_6, %c0_7] : memref<3x1x128xf32, #tpu.memory_space<vmem>>, vector<1x1x128xf32>
    %7 = vector.shape_cast %6 : vector<1x1x128xf32> to vector<1x128xf32>
    %8 = vector.broadcast %7 : vector<1x128xf32> to vector<8x128xf32>
    %9 = arith.addf %5, %8 : vector<8x128xf32>
    %cst_8 = arith.constant 0.000000e+00 : f32
    %10 = vector.broadcast %cst_8 : f32 to vector<8x128xf32>
    %11 = arith.maximumf %9, %10 : vector<8x128xf32>
    %c0_9 = arith.constant 0 : index
    %c0_10 = arith.constant 0 : index
    %c0_11 = arith.constant 0 : index
    %12 = vector.load %arg4[%c0_9, %c0_10, %c0_11] : memref<3x1x128xf32, #tpu.memory_space<vmem>>, vector<1x1x128xf32>
    %13 = vector.shape_cast %12 : vector<1x1x128xf32> to vector<1x128xf32>
    %14 = vector.broadcast %13 : vector<1x128xf32> to vector<8x128xf32>
    %15 = arith.mulf %11, %14 : vector<8x128xf32>
    %cst_12 = arith.constant dense<0.000000e+00> : vector<8xf32>
    %16 = vector.multi_reduction <add>, %15, %cst_12 [1] : vector<8x128xf32> to vector<8xf32>
    %17 = vector.shape_cast %16 : vector<8xf32> to vector<8x1xf32>
    %c0_13 = arith.constant 0 : index
    %18 = memref.load %arg5[%c0_13] : memref<3xf32, #tpu.memory_space<smem>>
    %19 = vector.broadcast %18 : f32 to vector<8x1xf32>
    %20 = arith.addf %17, %19 : vector<8x1xf32>
    %c1 = arith.constant 1 : index
    %c0_14 = arith.constant 0 : index
    %c0_15 = arith.constant 0 : index
    %21 = vector.load %arg1[%c1, %c0_14, %c0_15] : memref<3x8x128xf32, #tpu.memory_space<vmem>>, vector<1x8x128xf32>
    %22 = vector.shape_cast %21 : vector<1x8x128xf32> to vector<8x128xf32>
    %23 = arith.truncf %22 : vector<8x128xf32> to vector<8x128xbf16>
    %c1_16 = arith.constant 1 : index
    %c0_17 = arith.constant 0 : index
    %c0_18 = arith.constant 0 : index
    %24 = vector.load %arg2[%c1_16, %c0_17, %c0_18] : memref<3x128x128xbf16, #tpu.memory_space<vmem>>, vector<1x128x128xbf16>
    %25 = vector.shape_cast %24 : vector<1x128x128xbf16> to vector<128x128xbf16>
    %cst_19 = arith.constant dense<0.000000e+00> : vector<8x128xf32>
    %26 = tpu.matmul %23, %25, %cst_19 {dimension_numbers = #tpu.dot_dimension_numbers<[1], [0], [0], [1], [0, 0, 1, 1], [], []>} : vector<8x128xbf16>, vector<128x128xbf16>, vector<8x128xf32> -> vector<8x128xf32>
    %c1_20 = arith.constant 1 : index
    %c0_21 = arith.constant 0 : index
    %c0_22 = arith.constant 0 : index
    %27 = vector.load %arg3[%c1_20, %c0_21, %c0_22] : memref<3x1x128xf32, #tpu.memory_space<vmem>>, vector<1x1x128xf32>
    %28 = vector.shape_cast %27 : vector<1x1x128xf32> to vector<1x128xf32>
    %29 = vector.broadcast %28 : vector<1x128xf32> to vector<8x128xf32>
    %30 = arith.addf %26, %29 : vector<8x128xf32>
    %cst_23 = arith.constant 0.000000e+00 : f32
    %31 = vector.broadcast %cst_23 : f32 to vector<8x128xf32>
    %32 = arith.maximumf %30, %31 : vector<8x128xf32>
    %c1_24 = arith.constant 1 : index
    %c0_25 = arith.constant 0 : index
    %c0_26 = arith.constant 0 : index
    %33 = vector.load %arg4[%c1_24, %c0_25, %c0_26] : memref<3x1x128xf32, #tpu.memory_space<vmem>>, vector<1x1x128xf32>
    %34 = vector.shape_cast %33 : vector<1x1x128xf32> to vector<1x128xf32>
    %35 = vector.broadcast %34 : vector<1x128xf32> to vector<8x128xf32>
    %36 = arith.mulf %32, %35 : vector<8x128xf32>
    %cst_27 = arith.constant dense<0.000000e+00> : vector<8xf32>
    %37 = vector.multi_reduction <add>, %36, %cst_27 [1] : vector<8x128xf32> to vector<8xf32>
    %38 = vector.shape_cast %37 : vector<8xf32> to vector<8x1xf32>
    %c1_28 = arith.constant 1 : index
    %39 = memref.load %arg5[%c1_28] : memref<3xf32, #tpu.memory_space<smem>>
    %40 = vector.broadcast %39 : f32 to vector<8x1xf32>
    %41 = arith.addf %38, %40 : vector<8x1xf32>
    %c2 = arith.constant 2 : index
    %c0_29 = arith.constant 0 : index
    %c0_30 = arith.constant 0 : index
    %42 = vector.load %arg1[%c2, %c0_29, %c0_30] : memref<3x8x128xf32, #tpu.memory_space<vmem>>, vector<1x8x128xf32>
    %43 = vector.shape_cast %42 : vector<1x8x128xf32> to vector<8x128xf32>
    %44 = arith.truncf %43 : vector<8x128xf32> to vector<8x128xbf16>
    %c2_31 = arith.constant 2 : index
    %c0_32 = arith.constant 0 : index
    %c0_33 = arith.constant 0 : index
    %45 = vector.load %arg2[%c2_31, %c0_32, %c0_33] : memref<3x128x128xbf16, #tpu.memory_space<vmem>>, vector<1x128x128xbf16>
    %46 = vector.shape_cast %45 : vector<1x128x128xbf16> to vector<128x128xbf16>
    %cst_34 = arith.constant dense<0.000000e+00> : vector<8x128xf32>
    %47 = tpu.matmul %44, %46, %cst_34 {dimension_numbers = #tpu.dot_dimension_numbers<[1], [0], [0], [1], [0, 0, 1, 1], [], []>} : vector<8x128xbf16>, vector<128x128xbf16>, vector<8x128xf32> -> vector<8x128xf32>
    %c2_35 = arith.constant 2 : index
    %c0_36 = arith.constant 0 : index
    %c0_37 = arith.constant 0 : index
    %48 = vector.load %arg3[%c2_35, %c0_36, %c0_37] : memref<3x1x128xf32, #tpu.memory_space<vmem>>, vector<1x1x128xf32>
    %49 = vector.shape_cast %48 : vector<1x1x128xf32> to vector<1x128xf32>
    %50 = vector.broadcast %49 : vector<1x128xf32> to vector<8x128xf32>
    %51 = arith.addf %47, %50 : vector<8x128xf32>
    %cst_38 = arith.constant 0.000000e+00 : f32
    %52 = vector.broadcast %cst_38 : f32 to vector<8x128xf32>
    %53 = arith.maximumf %51, %52 : vector<8x128xf32>
    %c2_39 = arith.constant 2 : index
    %c0_40 = arith.constant 0 : index
    %c0_41 = arith.constant 0 : index
    %54 = vector.load %arg4[%c2_39, %c0_40, %c0_41] : memref<3x1x128xf32, #tpu.memory_space<vmem>>, vector<1x1x128xf32>
    %55 = vector.shape_cast %54 : vector<1x1x128xf32> to vector<1x128xf32>
    %56 = vector.broadcast %55 : vector<1x128xf32> to vector<8x128xf32>
    %57 = arith.mulf %53, %56 : vector<8x128xf32>
    %cst_42 = arith.constant dense<0.000000e+00> : vector<8xf32>
    %58 = vector.multi_reduction <add>, %57, %cst_42 [1] : vector<8x128xf32> to vector<8xf32>
    %59 = vector.shape_cast %58 : vector<8xf32> to vector<8x1xf32>
    %c2_43 = arith.constant 2 : index
    %60 = memref.load %arg5[%c2_43] : memref<3xf32, #tpu.memory_space<smem>>
    %61 = vector.broadcast %60 : f32 to vector<8x1xf32>
    %62 = arith.addf %59, %61 : vector<8x1xf32>
    %63 = arith.maximumf %20, %41 : vector<8x1xf32>
    %64 = arith.maximumf %63, %62 : vector<8x1xf32>
    %65 = arith.subf %20, %64 : vector<8x1xf32>
    %66 = math.exp %65 : vector<8x1xf32>
    %67 = arith.subf %41, %64 : vector<8x1xf32>
    %68 = math.exp %67 : vector<8x1xf32>
    %69 = arith.subf %62, %64 : vector<8x1xf32>
    %70 = math.exp %69 : vector<8x1xf32>
    %71 = arith.addf %66, %68 : vector<8x1xf32>
    %72 = arith.addf %71, %70 : vector<8x1xf32>
    %73 = tpu.reciprocal %72 {approx = true} : vector<8x1xf32> -> vector<8x1xf32>
    %74 = arith.mulf %66, %73 : vector<8x1xf32>
    %c0_44 = arith.constant 0 : index
    %c0_45 = arith.constant 0 : index
    %c0_46 = arith.constant 0 : index
    %75 = vector.load %arg1[%c0_44, %c0_45, %c0_46] : memref<3x8x128xf32, #tpu.memory_space<vmem>>, vector<1x8x128xf32>
    %76 = vector.shape_cast %75 : vector<1x8x128xf32> to vector<8x128xf32>
    %77 = vector.broadcast %74 : vector<8x1xf32> to vector<8x128xf32>
    %78 = arith.mulf %77, %76 : vector<8x128xf32>
    %79 = arith.mulf %68, %73 : vector<8x1xf32>
    %c1_47 = arith.constant 1 : index
    %c0_48 = arith.constant 0 : index
    %c0_49 = arith.constant 0 : index
    %80 = vector.load %arg1[%c1_47, %c0_48, %c0_49] : memref<3x8x128xf32, #tpu.memory_space<vmem>>, vector<1x8x128xf32>
    %81 = vector.shape_cast %80 : vector<1x8x128xf32> to vector<8x128xf32>
    %82 = vector.broadcast %79 : vector<8x1xf32> to vector<8x128xf32>
    %83 = arith.mulf %82, %81 : vector<8x128xf32>
    %84 = arith.addf %78, %83 : vector<8x128xf32>
    %85 = arith.mulf %70, %73 : vector<8x1xf32>
    %c2_50 = arith.constant 2 : index
    %c0_51 = arith.constant 0 : index
    %c0_52 = arith.constant 0 : index
    %86 = vector.load %arg1[%c2_50, %c0_51, %c0_52] : memref<3x8x128xf32, #tpu.memory_space<vmem>>, vector<1x8x128xf32>
    %87 = vector.shape_cast %86 : vector<1x8x128xf32> to vector<8x128xf32>
    %88 = vector.broadcast %85 : vector<8x1xf32> to vector<8x128xf32>
    %89 = arith.mulf %88, %87 : vector<8x128xf32>
    %90 = arith.addf %84, %89 : vector<8x128xf32>
    %c0_53 = arith.constant 0 : index
    %c0_54 = arith.constant 0 : index
    %91 = vector.load %arg6[%c0_53, %c0_54] : memref<8x128xf32, #tpu.memory_space<vmem>>, vector<8x128xf32>
    tpu.vector_store %arg6[%c0_53, %c0_54], %90 {strides = array<i32>} : memref<8x128xf32, #tpu.memory_space<vmem>>, vector<8x128xf32>,
    return
  }
  func.func @transform_0(%arg0: i32) -> (i32, i32, i32) {
    %c0_i32 = arith.constant 0 : i32
    %c0_i32_0 = arith.constant 0 : i32
    %c0_i32_1 = arith.constant 0 : i32
    return %c0_i32, %arg0, %c0_i32_0 : i32, i32, i32
  }
  func.func @transform_1(%arg0: i32) -> (i32, i32, i32) {
    %c0_i32 = arith.constant 0 : i32
    %c0_i32_0 = arith.constant 0 : i32
    %c0_i32_1 = arith.constant 0 : i32
    %c0_i32_2 = arith.constant 0 : i32
    return %c0_i32, %c0_i32_0, %c0_i32_1 : i32, i32, i32
  }
  func.func @transform_2(%arg0: i32) -> (i32, i32, i32) {
    %c0_i32 = arith.constant 0 : i32
    %c0_i32_0 = arith.constant 0 : i32
    %c0_i32_1 = arith.constant 0 : i32
    %c0_i32_2 = arith.constant 0 : i32
    return %c0_i32, %c0_i32_0, %c0_i32_1 : i32, i32, i32
  }
  func.func @transform_3(%arg0: i32) -> (i32, i32, i32) {
    %c0_i32 = arith.constant 0 : i32
    %c0_i32_0 = arith.constant 0 : i32
    %c0_i32_1 = arith.constant 0 : i32
    %c0_i32_2 = arith.constant 0 : i32
    return %c0_i32, %c0_i32_0, %c0_i32_1 : i32, i32, i32
  }
  func.func @transform_4(%arg0: i32) -> i32 {
    %c0_i32 = arith.constant 0 : i32
    %c0_i32_0 = arith.constant 0 : i32
    return %c0_i32 : i32
  }
  func.func @transform_5(%arg0: i32) -> (i32, i32) {
    %c0_i32 = arith.constant 0 : i32
    %c0_i32_0 = arith.constant 0 : i32
    return %arg0, %c0_i32 : i32, i32
  }
}

</mosaic_0001>

<bundles_post_ra>
// kernel: tpu_custom_call.1
= control target key start
LH: loop header
LB: loop body
LE: loop exit
PB: predicated region body
PF: predicated region fallthrough
CT: control target
= control target key end

     0   :  { %s1444_s0 = inlined_call_operand.hbm [shape: f32[3,16,128], index: 0, kind: input, shape index: {}]   ;;  %s1445_s1 = inlined_call_operand.hbm [shape: bf16[3,128,128], index: 1, kind: input, shape index: {}]   ;;  %s1446_s2 = inlined_call_operand.hbm [shape: f32[3,1,128], index: 2, kind: input, shape index: {}]   ;;  %s1447_s3 = inlined_call_operand.hbm [shape: f32[3,1,128], index: 3, kind: input, shape index: {}]   ;;  %s1448_s4 = inlined_call_operand.vmem [shape: f32[3], index: 4, kind: input, shape index: {}]   ;;  %s1449_s5 = inlined_call_operand.hbm [shape: f32[16,128], index: 5, kind: output, shape index: {}]  }
   0x1   :  { %1450 = sst [smem:[#allocation18_spill]] %s1445_s1 }
   0x2   :  { %10 = vsyncpa [#allocation3], 0 }
   0x3   :  { %12 = vsyncpa [#allocation3 + $0x1], 0 }
   0x4   :  { %13 = vsyncpa [#allocation7], 0 }
   0x5   :  { %14 = vsyncpa [#allocation10], 0 }
   0x6   :  { %15 = vsyncpa [#allocation5], 0 }
   0x7   :  { %16 = vsyncpa [#allocation4], 0 }
   0x8   :  { %18 = vsyncpa [#allocation4 + $0x1], 0  ;;  %s1256_s18 = smov 0   ;;  %s1258_s19 = smov 0  }
   0x9   :  { %s1260_s20 = smov 0   ;;  %s1262_s21 = smov 0  }
   0xa LB: > { %s1277_s22 = sadd.s32 4294967295, %s1213_s21   ;;  %s748_s23 = sadd.s32 4294967294, %s1213_s21   ;;  %s1213_s21 = sphi %s1262_s21, %s1462_s21   ;;  %s1209_s20 = sphi %s1260_s20, %s1461_s20   ;;  %s1205_s19 = sphi %s1258_s19, %s1460_s19   ;;  %s1201_s18 = sphi %s1256_s18, %s1459_s18  }
   0xb   : > { %p44_p0 = scmp.ne.s32.totalorder %s1205_s19, %s1201_s18  ;;  %p45_p1 = scmp.eq.s32.totalorder %s1277_s22, 0 }
   0xc   : > { %p152_p2 = scmp.eq.s32.totalorder %s1277_s22, 1  ;;  %p158_p3 = scmp.eq.s32.totalorder %s748_s23, 1 }
   0xd   : > { %p1286_p4 = por %p45_p1, %p44_p0  ;;  %p749_p5 = scmp.ge.s32.totalorder %s1213_s21, 1 }
   0xe   : > { %p1291_p6 = por %p158_p3, %p44_p0  ;;  %p165_p7 = scmp.lt.s32.totalorder %s1213_s21, 3 }
   0xf   : > { %s1453_s1 = sld [smem:[#allocation18_spill]]  ;;  %s1215_s30 = smov [#allocation6]  }
  0x10   : > { %p1299_p8 = pnand %p749_p5, %p165_p7  ;;  %s178_s6 = sshll.u32 %s1215_s30, 4  ;;  %s179_s6 = int_to_ptr.vmem [resolvable:$true] %s178_s6 }
  0x11   : > { %s190_s10 = sshll.u32 %s1446_s2, 4  ;;  %s1216_s11 = smov 64   ;;  %s191_s10 = int_to_ptr.hbm [resolvable:$true] %s190_s10 }
  0x12   : > { %p912_p9 = pneg %p1299_p8  ;;  %s1217_s12 = smov 4  }
  0x13   : > { %s1218_s13 = smov [#allocation8]   ;;  %s1219_s15 = smov 16  }
  0x14   : > { %p1307_p10 = pnand %p912_p9, %p45_p1  ;;  %s192_s14 = sshll.u32 %s1218_s13, 4  ;;  %s193_s14 = int_to_ptr.vmem [resolvable:$true] %s192_s14 }
  0x15   : > { %s176_s28 = sshll.u32 %s1453_s1, 4  ;;  %s1220_s16 = smov 1   ;;  %s177_s28 = int_to_ptr.hbm [resolvable:$true] %s176_s28 }
  0x16   : > { %915 = dma.hbm_to_vmem [thread:$0]  (!%p1307_p10), %s177_s28, 3072, %s179_s6, [#allocation7], %s1216_s11, %s1216_s11, %s1217_s12  }
  0x17   : > { %918 = dma.hbm_to_vmem [thread:$0]  (!%p1307_p10), %s191_s10, 48, %s193_s14, [#allocation7], %s1219_s15, %s1219_s15, %s1220_s16  }
  0x18   : > { %s204_s26 = sshll.u32 %s1447_s3, 4  ;;  %s1221_s27 = smov [#allocation9]   ;;  %s205_s26 = int_to_ptr.hbm [resolvable:$true] %s204_s26 }
  0x19   : > { %s206_s28 = sshll.u32 %s1221_s27, 4  ;;  %s219_s8 = sshll.u32 %s1448_s4, 4  ;;  %s207_s28 = int_to_ptr.vmem [resolvable:$true] %s206_s28  ;;  %s220_s8 = int_to_ptr.vmem [resolvable:$true] %s219_s8 }
  0x1a   : > { %921 = dma.hbm_to_vmem [thread:$0]  (!%p1307_p10), %s205_s26, 48, %s207_s28, [#allocation10], %s1219_s15, %s1219_s15, %s1220_s16  }
  0x1b   : > { %s1222_s9 = smov [#allocation11]   ;;  %s1330_s10 = sadd.s32 1, %s1213_s21  }
  0x1c   : > { %924 = dma.vmem_to_smem (!%p1307_p10), %s220_s8, 16, %s1222_s9, [#allocation5]  }
  0x1d   : > { %s28_s11 = ssub.s32 %s1213_s21, %s1330_s10  ;;  %s31_s12 = sadd.s32 1, %s1209_s20 }
  0x1e   : > { %p29_p12 = scmp.eq.s32.totalorder %s28_s11, 0  ;;  %p38_p13 = scmp.ne.s32.totalorder %s1209_s20, %s1205_s19 }
  0x1f   : > { %p39_p0 = scmp.eq.s32.totalorder %s1213_s21, 0  ;;  %p937_p7 = scmp.lt.s32.totalorder %s1213_s21, 2 }
  0x20   : > { %s1339_s13 = scalar_select %p29_p12, %s1209_s20, %s31_s12  }
  0x21   : > { %p40_p3 = por %p39_p0, %p38_p13  ;;  %p1343_p5 = por %p152_p2, %p38_p13 }
  0x22   : > { %s230_s15 = sand.u32 1, %s1209_s20   ;;  %s755_s16 = sshll.u32 %s1213_s21, 3 }
  0x23   : > { %s890_s7 = smul.u32 24, %s230_s15  ;;  %p1350_p9 = pnand %p937_p7, %p40_p3 }
  0x24   : > { %s238_s27 = scalar_lea.hbm %s1444_s0, %s755_s16  ;;  %s231_s8 = scalar_lea.sflag [#allocation3], %s230_s15 }
  0x25   : > { %s239_s28 = sshll.u32 %s238_s27, 4  ;;  %s234_s30 = scalar_lea.vmem [#allocation2], %s890_s7  ;;  %s240_s28 = int_to_ptr.hbm [resolvable:$true] %s239_s28 }
  0x26   : > { %s241_s6 = sshll.u32 %s234_s30, 4  ;;  %s1105_s9 = sshra.s32 %s240_s28, 4  ;;  %s242_s6 = int_to_ptr.vmem [resolvable:$true] %s241_s6  ;;  %s1106_s9 = int_to_ptr.hbm [resolvable:$true] %s1105_s9 }
  0x27   : > { %s1107_s11 = scalar_lea.hbm %s1106_s9, 24  ;;  %p1109_p10 = pneg %p1350_p9 }
  0x28   : > { %p1108_p2 = scmp.ne.s32.totalorder %s1106_s9, %s1107_s11  ;;  %s1112_s23 = scalar_lea.hbm %s1444_s0, 48 }
  0x29   : > { %p1113_p0 = scmp.lt.s32.totalorder %s1106_s9, %s1444_s0  ;;  %p1114_p3 = scmp.lt.s32.totalorder %s1112_s23, %s1107_s11 }
  0x2a   : > { %p1110_p12 = pnand %p1109_p10, %p1108_p2 }
  0x2b   : > { %p1115_p7 = por %p1114_p3, %p1113_p0 }
  0x2c   : > { %p1111_p13 = pneg %p1110_p12 }
  0x2e   : > { %p1116_p11 = pnand %p1115_p7, %p1111_p13 }
  0x30   : > { %1119 = shalt.err (!%p1116_p11)
}
  0x31   : > { %s1223_s15 = smov 256   ;;  %s1224_s7 = smov 128  }
  0x32   : > { %s1225_s27 = smov 8   ;;  %253 = sbr.rel (%p1299_p8) target bundleno = 393 (0x189), region = 40 }
  0x33   : > { %928 = dma.hbm_to_vmem [thread:$0]  (!%p1350_p9), %s240_s28, 384, %s242_s6, %s231_s8, %s1223_s15, %s1224_s7, %s1225_s27  }
  0x34   : > { %s1370_s1 = sand.u32 (!%p1299_p8), 1, %s1205_s19  }
  0x35   : > { %s891_s30 = smul.u32 (!%p1299_p8), 24, %s1370_s1  ;;  %s256_s9 = scalar_lea.sflag (!%p1299_p8), [#allocation3], %s1370_s1 }
  0x37   : > { %s1374_s11 = scalar_lea.vmem [#allocation2], %s891_s30 }
  0x38   : > { %1180 = dma.done.wait (%p1286_p4), %s256_s9, 384  }
  0x39   : > { %1182 = vsyncadd (%p1286_p4), %s256_s9, 4294966912 }
  0x3a   : > { %1184 = dma.done.wait (%p45_p1), [#allocation7], 3120  }
  0x3b   : > { %1186 = vsyncadd (%p45_p1), [#allocation7], 4294964176 }
  0x3c   : > { %1188 = dma.done.wait (%p45_p1), [#allocation10], 48  }
  0x3d   : > { %1190 = vsyncadd (%p45_p1), [#allocation10], 4294967248 }
  0x3e   : > { %1192 = dma.done.wait (%p45_p1), [#allocation5], 16  }
  0x3f   : > { %1194 = vsyncadd (%p45_p1), [#allocation5], 4294967280 }
  0x40   : > { %285 = sfence }
  0x41   : > { %v873_v0 = vld [vmem:[#allocation6 + $0x38] sm:$0xff]  ;;  %v872_v3 = vld [vmem:[#allocation6 + $0x30] sm:$0xff]  ;;  %v871_v6 = vld [vmem:[#allocation6 + $0x28] sm:$0xff]  ;;  %s399_s24 = sld [smem:[#allocation11]]  ;;  %s761_s28 = sshll.u32 %s1370_s1, 3 }
  0x42   : > { %v881_v1 = vld [vmem:[#allocation6 + $0x78] sm:$0xff]  ;;  %378 = vmatpush.bf16.msra.mxu0 %v873_v0  ;;  %v880_v4 = vld [vmem:[#allocation6 + $0x70] sm:$0xff]  ;;  %v879_v7 = vld [vmem:[#allocation6 + $0x68] sm:$0xff]  ;;  %s827_s29 = sld [smem:[#allocation11 + $0x1]]  ;;  %s863_s6 = sshll.u32 %s1277_s22, 3 }
  0x43   : > { %v889_v2 = vld [vmem:[#allocation6 + $0xb8] sm:$0xff]  ;;  %475 = vmatpush.bf16.msra.mxu1 %v881_v1  ;;  %v888_v5 = vld [vmem:[#allocation6 + $0xb0] sm:$0xff]  ;;  %v887_v8 = vld [vmem:[#allocation6 + $0xa8] sm:$0xff]  ;;  %s861_s17 = sld [smem:[#allocation11 + $0x2]]  ;;  %s632_s23 = scalar_lea.hbm %s1449_s5, %s863_s6 }
  0x44   : > { %573 = vmatpush.bf16.msra.mxu2 %v889_v2  ;;  %v870_v9 = vld [vmem:[#allocation6 + $0x20] sm:$0xff]  ;;  %v869_v12 = vld [vmem:[#allocation6 + $0x18] sm:$0xff]  ;;  %v868_v15 = vld [vmem:[#allocation6 + $0x10] sm:$0xff]  ;;  %s307_s26 = scalar_lea.vmem [#allocation12], %s761_s28  ;;  %s636_s15 = sshll.u32 %s632_s23, 4  ;;  %s637_s15 = int_to_ptr.hbm [resolvable:$true] %s636_s15 }
  0x45   : > { %v878_v10 = vld [vmem:[#allocation6 + $0x60] sm:$0xff]  ;;  %v877_v13 = vld [vmem:[#allocation6 + $0x58] sm:$0xff]  ;;  %v876_v16 = vld [vmem:[#allocation6 + $0x50] sm:$0xff]  ;;  %s634_s16 = sshll.u32 %s307_s26, 4  ;;  %s622_s22 = scalar_lea.sflag [#allocation4], %s1370_s1  ;;  %s635_s16 = int_to_ptr.vmem [resolvable:$true] %s634_s16 }
  0x46   : > { %379 = vmatpush.bf16.msra.mxu0 %v872_v3  ;;  %v886_v11 = vld [vmem:[#allocation6 + $0xa0] sm:$0xff]  ;;  %v885_v14 = vld [vmem:[#allocation6 + $0x98] sm:$0xff]  ;;  %v884_v17 = vld [vmem:[#allocation6 + $0x90] sm:$0xff]  ;;  %s1149_s7 = sshra.s32 %s637_s15, 4  ;;  %s1150_s7 = int_to_ptr.hbm [resolvable:$true] %s1149_s7 }
  0x47   : > { %476 = vmatpush.bf16.msra.mxu1 %v880_v4  ;;  %v867_v18 = vld [vmem:[#allocation6 + $0x8] sm:$0xff]  ;;  %v866_v21 = vld [vmem:[#allocation6] sm:$0xff]  ;;  %v1396_v24 = vld [vmem:[%s1374_s11 + $0x8] sm:$0xff]  ;;  %v400_v52 = vstv %s399_s24  ;;  %s1151_s27 = scalar_lea.hbm %s1150_s7, 8  ;;  %p1156_p11 = scmp.lt.s32.totalorder %s1150_s7, %s1449_s5 }
  0x48   : > { %574 = vmatpush.bf16.msra.mxu2 %v888_v5  ;;  %v875_v19 = vld [vmem:[#allocation6 + $0x48] sm:$0xff]  ;;  %v874_v22 = vld [vmem:[#allocation6 + $0x40] sm:$0xff]  ;;  %v404_v28 = vpack.c.bf16 %v1396_v24, %v1396_v24  ;;  %v498_v53 = vstv %s827_s29  ;;  %p1152_p1 = scmp.ne.s32.totalorder %s1150_s7, %s1151_s27 }
  0x49   : > { %v883_v20 = vld [vmem:[#allocation6 + $0x88] sm:$0xff]  ;;  %v882_v25 = vld [vmem:[#allocation6 + $0x80] sm:$0xff]  ;;  %v596_v54 = vstv %s861_s17 }
  0x4a   : > { %380 = vmatpush.bf16.msra.mxu0 %v871_v6  ;;  %v1393_v23 = vld [vmem:[%s1374_s11] sm:$0xff]  ;;  %v1399_v26 = vld [vmem:[%s1374_s11 + $0x10] sm:$0xff]  ;;  %p1153_p4 = pnand %p1152_p1, %p1343_p5  ;;  %s1155_s11 = scalar_lea.hbm %s1449_s5, 16 }
  0x4b   : > { %477 = vmatpush.bf16.msra.mxu1 %v879_v7  ;;  %v309_v27 = vpack.c.bf16 %v1393_v23, %v1393_v23  ;;  %v502_v29 = vpack.c.bf16 %v1399_v26, %v1399_v26  ;;  %v986_v30 = vld [vmem:[#allocation8] ss:$0 sm:$0xff]  ;;  %v987_v31 = vld [vmem:[#allocation8 + $0x1] ss:$0 sm:$0xff]  ;;  %v989_v35 = vld [vmem:[#allocation9] ss:$0 sm:$0xff]  ;;  %p1157_p9 = scmp.lt.s32.totalorder %s1155_s11, %s1151_s27 }
  0x4c   : > { %575 = vmatpush.bf16.msra.mxu2 %v887_v8  ;;  %v988_v38 = vld [vmem:[#allocation8 + $0x2] ss:$0 sm:$0xff]  ;;  %v990_v42 = vld [vmem:[#allocation9 + $0x1] ss:$0 sm:$0xff]  ;;  %v991_v46 = vld [vmem:[#allocation9 + $0x2] ss:$0 sm:$0xff]  ;;  %p1154_p8 = pneg %p1153_p4 }
  0x4d   : > { %p1158_p2 = por %p1157_p9, %p1156_p11 }
  0x4e   : > { %381 = vmatpush.bf16.msra.mxu0 %v870_v9 }
  0x4f   : > { %478 = vmatpush.bf16.msra.mxu1 %v878_v10  ;;  %p1159_p10 = pnand %p1158_p2, %p1154_p8 }
  0x50   : > { %576 = vmatpush.bf16.msra.mxu2 %v886_v11 }
  0x52   : > { %382 = vmatpush.bf16.msra.mxu0 %v869_v12 }
  0x53   : > { %479 = vmatpush.bf16.msra.mxu1 %v877_v13 }
  0x54   : > { %577 = vmatpush.bf16.msra.mxu2 %v885_v14 }
  0x56   : > { %383 = vmatpush.bf16.msra.mxu0 %v868_v15 }
  0x57   : > { %480 = vmatpush.bf16.msra.mxu1 %v876_v16 }
  0x58   : > { %578 = vmatpush.bf16.msra.mxu2 %v884_v17 }
  0x5a   : > { %384 = vmatpush.bf16.msra.mxu0 %v867_v18 }
  0x5b   : > { %481 = vmatpush.bf16.msra.mxu1 %v875_v19 }
  0x5c   : > { %579 = vmatpush.bf16.msra.mxu2 %v883_v20 }
  0x5e   : > { %385 = vmatpush.bf16.msra.mxu0 %v866_v21 }
  0x5f   : > { %482 = vmatpush.bf16.msra.mxu1 %v874_v22 }
  0x60   : > { %580 = vmatpush.bf16.msra.mxu2 %v882_v25 }
  0x61   : > { %386 = vmatmul.bf16.vlgmr.msra.gmra.mxu0 %v309_v27 }
  0x62   : > { %483 = vmatmul.bf16.vlgmr.msra.gmra.mxu1 %v404_v28 }
  0x63   : > { %581 = vmatmul.bf16.vlgmr.msra.gmra.mxu2 %v502_v29 }
  0xde   : > { %v387_v32 = vpop.f32.mrf.mxu0 }
  0xdf   : > { %v484_v33 = vpop.f32.mrf.mxu1  ;;  %v388_v34 = vadd.f32 %v986_v30, %v387_v32 }
  0xe0   : > { %v485_v37 = vadd.f32 %v987_v31, %v484_v33 }
  0xe1   : > { %v391_v36 = vmax.f32 %v388_v34, 0.0 }
  0xe2   : > { %v488_v40 = vmax.f32 %v485_v37, 0.0 }
  0xe3   : > { %v396_v39 = vmul.f32 %v989_v35, %v391_v36 }
  0xe4   : > { %v494_v48 = vmul.f32 %v990_v42, %v488_v40 }
  0xe5   : > { %397 = vadd.xlane.f32.xlu0 %v396_v39 }
  0xe6   : > { %v582_v41 = vpop.f32.mrf.mxu2  ;;  %v389_v44 = vpop.f32.mrf.mxu0 }
  0xe7   : > { %v583_v43 = vadd.f32 %v988_v38, %v582_v41  ;;  %v486_v45 = vpop.f32.mrf.mxu1 }
  0xe9   : > { %v586_v47 = vmax.f32 %v583_v43, 0.0 }
  0xeb   : > { %v592_v49 = vmul.f32 %v991_v46, %v586_v47 }
  0xed   : > { %593 = vadd.xlane.f32.xlu1 %v592_v49  ;;  %495 = vadd.xlane.f32.xlu0 %v494_v48 }
  0xee   : > { %v584_v50 = vpop.f32.mrf.mxu2 }
 0x158   : > { %v398_v51 = vpop.xlane.xlu0 %397 }
 0x159   : > { %v401_v57 = vadd.f32 %v400_v52, %v398_v51 }
 0x160   : > { %v594_v55 = vpop.xlane.xlu1 %593  ;;  %v496_v56 = vpop.xlane.xlu0 %495 }
 0x161   : > { %v499_v58 = vadd.f32 %v498_v53, %v496_v56  ;;  %v597_v59 = vadd.f32 %v596_v54, %v594_v55 }
 0x163   : > { %v598_v60 = vmax.f32 %v401_v57, %v499_v58 }
 0x165   : > { %v599_v61 = vmax.f32 %v598_v60, %v597_v59 }
 0x167   : > { %v600_v62 = vsub.f32 %v401_v57, %v599_v61  ;;  %v603_v63 = vsub.f32 %v499_v58, %v599_v61  ;;  %v606_v0 = vsub.f32 %v597_v59, %v599_v61 }
 0x169   : > { %v601_v1 = vmul.f32 1.442695, %v600_v62  ;;  %v604_v2 = vmul.f32 1.442695, %v603_v63  ;;  %v607_v3 = vmul.f32 1.442695, %v606_v0 }
 0x16b   : > { %992 = vpow2.f32 %v601_v1 }
 0x16c   : > { %994 = vpow2.f32 %v604_v2 }
 0x16d   : > { %996 = vpow2.f32 %v607_v3 }
 0x171   : > { %v993_v4 = vpop.eup %992 }
 0x172   : > { %v995_v5 = vpop.eup %994 }
 0x173   : > { %v609_v6 = vadd.f32 %v995_v5, %v993_v4  ;;  %v997_v7 = vpop.eup %996 }
 0x175   : > { %v610_v8 = vadd.f32 %v997_v7, %v609_v6 }
 0x177   : > { %998 = vrcp.f32 %v610_v8 }
 0x17d   : > { %v999_v9 = vpop.eup %998 }
 0x17e   : > { %v612_v10 = vmul.f32 %v999_v9, %v993_v4  ;;  %v614_v11 = vmul.f32 %v999_v9, %v995_v5  ;;  %v617_v12 = vmul.f32 %v999_v9, %v997_v7 }
 0x180   : > { %v613_v13 = vmul.f32 %v612_v10, %v1393_v23  ;;  %v615_v14 = vmul.f32 %v1396_v24, %v614_v11  ;;  %v618_v16 = vmul.f32 %v1399_v26, %v617_v12 }
 0x182   : > { %v616_v15 = vadd.f32 %v615_v14, %v613_v13 }
 0x184   : > { %v619_v17 = vadd.f32 %v618_v16, %v616_v15 }
 0x186   : > { %620 = vst [vmem:[%s307_s26] sm:$0xff] %v619_v17 }
 0x187   : > { %1162 = shalt.err (!%p1159_p10)
}
 0x188   : > { %910 = dma.vmem_to_hbm [thread:$0]  (%p1343_p5), %s635_s16, 128, %s637_s15, %s622_s22  }
 0x189 PF: > { %s648_s1 = sand.u32 1, %s1201_s18   ;;  %p1458_p12 = scmp.ge.s32.totalorder %s1213_s21, 2 }
 0x18a   : > { %s649_s17 = scalar_lea.sflag [#allocation4], %s648_s1 }
 0x18b   : > { %p930_p13 = pnand %p1458_p12, %p1291_p6 }
 0x18d   : > { %p931_p0 = pneg %p930_p13 }
 0x18f   : > { %1196 = dma.done.wait (%p931_p0), %s649_s17, 128  }
 0x190   : > { %1198 = vsyncadd (%p931_p0), %s649_s17, 4294967168  ;;  %p21_p3 = scmp.ge.s32.totalorder %s1330_s10, 4   ;;  %s1459_s18 = smov %s1205_s19 }
 0x191   : > { %s1460_s19 = smov %s1209_s20  ;;  %s1461_s20 = smov %s1339_s13 }
 0x192   : > { %s1462_s21 = smov %s1330_s10  ;;  %23 = sbr.rel (!%p21_p3) target bundleno = 10 (0xa), region = 110 }
 0x197   :  { %655 = vsyncpa [#allocation3], 1 }
 0x198   :  { %657 = vsyncpa [#allocation3 + $0x1], 1 }
 0x199   :  { %658 = vsyncpa [#allocation7], 1 }
 0x19a   :  { %659 = vsyncpa [#allocation10], 1 }
 0x19b   :  { %660 = vsyncpa [#allocation4], 1 }
 0x19c   :  { %662 = vsyncpa [#allocation4 + $0x1], 1 }
 0x19d   :  { %663 = vsyncpa [#allocation5], 1 }
 0x19e   :  { %665 = vsyncpa [#allocation5 + $0x1], 1 }

</bundles_post_ra>
